<compile_context>
chip_gen: v7x
topology: tpu7x:2x2x1
jax: 0.10.0
libtpu: 0.0.40
codegen_flags: <defaults>
</compile_context>

<pallas_src>
import math
import functools

import jax
import jax.numpy as jnp
import numpy as np
from jax import lax
from jax.experimental import pallas as pl
from jax.experimental.pallas import tpu as pltpu


def _mha_kernel(x_ref, bias_ref, wqkv_ref, wo_ref, o_ref, *, n_head, d_qkv):
    x = x_ref[0]          # (L, d_model)
    bias = bias_ref[0]    # (1, L) additive key-mask bias (0 keep / -1e9 pad)

    hd = n_head * d_qkv

    # Single fused QKV projection: (L, d_model) @ (d_model, 3*H*d_qkv)
    qkv = jnp.dot(x, wqkv_ref[...], preferred_element_type=jnp.float32)
    q = qkv[:, 0:hd]          # (L, H*d_qkv), head h at columns [h*d_qkv, (h+1)*d_qkv)
    k = qkv[:, hd:2 * hd]
    v = qkv[:, 2 * hd:3 * hd]

    scale = 1.0 / math.sqrt(d_qkv)

    ctx_heads = []
    for h in range(n_head):   # static unroll; tiny head count
        sl = slice(h * d_qkv, (h + 1) * d_qkv)
        q_h = q[:, sl]
        k_h = k[:, sl]
        v_h = v[:, sl]

        # Contract over d_qkv directly (no explicit k.T relayout).
        s = lax.dot_general(
            q_h, k_h,
            dimension_numbers=(((1,), (1,)), ((), ())),
            preferred_element_type=jnp.float32,
        ) * scale                                   # (L, L)
        s = s + bias                                # broadcast key mask over query rows

        # softmax over keys (last dim)
        s = s - jnp.max(s, axis=-1, keepdims=True)
        p = jnp.exp(s)
        denom = jnp.sum(p, axis=-1, keepdims=True)
        r = pl.reciprocal(denom, approx=True)       # EUP slot, otherwise idle
        r = r * (2.0 - denom * r)                   # one Newton step -> ~f32 accuracy
        p = p * r

        ctx_heads.append(
            jnp.dot(p, v_h, preferred_element_type=jnp.float32))  # (L, d_qkv)

    # Concatenate heads and do ONE output projection; identical to summing
    # per-head (ctx_h @ w_o[h]) contributions.
    ctx = jnp.concatenate(ctx_heads, axis=-1)                        # (L, H*d_qkv)
    out = jnp.dot(ctx, wo_ref[...], preferred_element_type=jnp.float32)  # (L, d_model)

    # TODO(synk): at production shapes make the output lane-dim a multiple of
    # 128 (lane-dense stores); irrelevant at d_model=32 toy sizes.
    o_ref[0] = out


def multi_head_encoder(x, mask, w_q, w_k, w_v, w_o):
    """x: [B, L, d_model] f32, mask: [B, L] (1 = keep, 0 = pad)."""
    B, L, d_model = x.shape
    n_head, _, d_qkv = w_q.shape
    hd = n_head * d_qkv

    # Fused QKV weight: (d_model, 3*H*d_qkv), head h contiguous within each segment.
    def fold(w):  # (H, d_model, d_qkv) -> (d_model, H*d_qkv)
        return jnp.transpose(w, (1, 0, 2)).reshape(d_model, hd)

    w_qkv = jnp.concatenate([fold(w_q), fold(w_k), fold(w_v)], axis=-1)  # (d_model, 3*hd)
    w_o_cat = w_o.reshape(hd, d_model)                                   # (hd, d_model)

    # Additive mask bias: 0 where keep, -1e9 where padded.
    bias = ((mask.astype(jnp.float32) - 1.0) * 1e9).reshape(B, 1, L)

    kernel = functools.partial(_mha_kernel, n_head=n_head, d_qkv=d_qkv)

    return pl.pallas_call(
        kernel,
        out_shape=jax.ShapeDtypeStruct((B, L, d_model), jnp.float32),
        grid_spec=pltpu.PrefetchScalarGridSpec(
            num_scalar_prefetch=0,
            grid=(B,),
            in_specs=[
                pl.BlockSpec((1, L, d_model), lambda b: (b, 0, 0)),   # x
                pl.BlockSpec((1, 1, L), lambda b: (b, 0, 0)),         # mask bias
                pl.BlockSpec((d_model, 3 * hd), lambda b: (0, 0)),    # fused W_qkv
                pl.BlockSpec((hd, d_model), lambda b: (0, 0)),        # W_o (concat)
            ],
            out_specs=pl.BlockSpec((1, L, d_model), lambda b: (b, 0, 0)),
        ),
        compiler_params=pltpu.CompilerParams(
            dimension_semantics=("parallel",)),   # lets v7x use both TensorCores
    )(x, bias, w_qkv, w_o_cat)


def _reference(x, mask, w_q, w_k, w_v, w_o, d_qkv):
    q = jnp.einsum('blm,nmh->bnlh', x, w_q)
    k = jnp.einsum('blm,nmh->bnlh', x, w_k)
    v = jnp.einsum('blm,nmh->bnlh', x, w_v)
    scores = jnp.einsum('bnlh,bnkh->bnlk', q, k) / math.sqrt(d_qkv)
    scores = jnp.where(mask[:, None, None, :] == 0.0, -1e9, scores)
    p = jax.nn.softmax(scores, axis=-1)
    ctx = jnp.einsum('bnlk,bnkh->bnlh', p, v)
    out = jnp.einsum('bnlh,nhm->bnlm', ctx, w_o)
    return out.sum(axis=1)


if __name__ == "__main__":
    # Small shapes consistent with the module's forward:
    B, L, d_model, n_head, d_qkv = 2, 8, 32, 4, 16

    key = jax.random.PRNGKey(0)
    kx, kq, kk, kv, ko = jax.random.split(key, 5)

    x = jax.random.normal(kx, (B, L, d_model), dtype=jnp.float32)

    # mask: 1 = real token, 0 = padding (second example padded after 5 tokens)
    lengths = jnp.array([L, 5], dtype=jnp.int32)
    mask = (jnp.arange(L)[None, :] < lengths[:, None]).astype(jnp.float32)

    # Deterministic xavier-normal-like init (matches nn.init.xavier_normal_ std).
    def xavier_normal(k, shape):
        fan_in = shape[1] * shape[2]
        fan_out = shape[0] * shape[2]
        std = math.sqrt(2.0 / (fan_in + fan_out))
        return std * jax.random.normal(k, shape, dtype=jnp.float32)

    w_q = xavier_normal(kq, (n_head, d_model, d_qkv))
    w_k = xavier_normal(kk, (n_head, d_model, d_qkv))
    w_v = xavier_normal(kv, (n_head, d_model, d_qkv))
    w_o = xavier_normal(ko, (n_head, d_qkv, d_model))

    out = multi_head_encoder(x, mask, w_q, w_k, w_v, w_o)
    out = jax.block_until_ready(out)

    ref = _reference(x, mask, w_q, w_k, w_v, w_o, d_qkv)
    np.testing.assert_allclose(np.asarray(out), np.asarray(ref), rtol=1e-4, atol=1e-4)

    print("KERNEL_OK")
</pallas_src>

<mosaic_0001>
module attributes {stable_mosaic.version = 11 : i64} {
  func.func @_mha_kernel(%arg0: i32, %arg1: memref<1x8x32xf32, #tpu.memory_space<vmem>>, %arg2: memref<1x1x8xf32, #tpu.memory_space<vmem>>, %arg3: memref<32x192xf32, #tpu.memory_space<vmem>>, %arg4: memref<64x32xf32, #tpu.memory_space<vmem>>, %arg5: memref<1x8x32xf32, #tpu.memory_space<vmem>>) attributes {dimension_semantics = [#tpu.dimension_semantics<parallel>], iteration_bounds = array<i64: 2>, scalar_prefetch = 0 : i64, scratch_operands = 0 : i64, tpu.core_type = #tpu.core_type<tc>, window_params = [{transform_indices = @transform_0, window_bounds = array<i64: 1, 8, 32>}, {transform_indices = @transform_1, window_bounds = array<i64: 1, 1, 8>}, {pipeline_mode = #tpu.pipeline_mode<synchronous>, transform_indices = @transform_2, window_bounds = array<i64: 32, 192>}, {pipeline_mode = #tpu.pipeline_mode<synchronous>, transform_indices = @transform_3, window_bounds = array<i64: 64, 32>}, {transform_indices = @transform_4, window_bounds = array<i64: 1, 8, 32>}]} {
    %c0 = arith.constant 0 : index
    %c0_0 = arith.constant 0 : index
    %c0_1 = arith.constant 0 : index
    %0 = vector.load %arg1[%c0, %c0_0, %c0_1] : memref<1x8x32xf32, #tpu.memory_space<vmem>>, vector<1x8x32xf32>
    %1 = vector.shape_cast %0 : vector<1x8x32xf32> to vector<8x32xf32>
    %c0_2 = arith.constant 0 : index
    %c0_3 = arith.constant 0 : index
    %c0_4 = arith.constant 0 : index
    %2 = vector.load %arg2[%c0_2, %c0_3, %c0_4] : memref<1x1x8xf32, #tpu.memory_space<vmem>>, vector<1x1x8xf32>
    %3 = vector.shape_cast %2 : vector<1x1x8xf32> to vector<1x8xf32>
    %c0_5 = arith.constant 0 : index
    %c0_6 = arith.constant 0 : index
    %4 = vector.load %arg3[%c0_5, %c0_6] : memref<32x192xf32, #tpu.memory_space<vmem>>, vector<32x192xf32>
    %cst = arith.constant dense<0.000000e+00> : vector<8x192xf32>
    %5 = tpu.matmul %1, %4, %cst {dimension_numbers = #tpu.dot_dimension_numbers<[1], [0], [0], [1], [0, 0, 1, 1], [], []>} : vector<8x32xf32>, vector<32x192xf32>, vector<8x192xf32> -> vector<8x192xf32>
    %6 = vector.extract_strided_slice %5 {offsets = [0, 0], sizes = [8, 64], strides = [1, 1]} : vector<8x192xf32> to vector<8x64xf32>
    %7 = vector.extract_strided_slice %5 {offsets = [0, 64], sizes = [8, 64], strides = [1, 1]} : vector<8x192xf32> to vector<8x64xf32>
    %8 = vector.extract_strided_slice %5 {offsets = [0, 128], sizes = [8, 64], strides = [1, 1]} : vector<8x192xf32> to vector<8x64xf32>
    %9 = vector.extract_strided_slice %6 {offsets = [0, 0], sizes = [8, 16], strides = [1, 1]} : vector<8x64xf32> to vector<8x16xf32>
    %10 = vector.extract_strided_slice %7 {offsets = [0, 0], sizes = [8, 16], strides = [1, 1]} : vector<8x64xf32> to vector<8x16xf32>
    %11 = vector.extract_strided_slice %8 {offsets = [0, 0], sizes = [8, 16], strides = [1, 1]} : vector<8x64xf32> to vector<8x16xf32>
    %cst_7 = arith.constant dense<0.000000e+00> : vector<8x8xf32>
    %12 = tpu.matmul %9, %10, %cst_7 {dimension_numbers = #tpu.dot_dimension_numbers<[1], [1], [0], [0], [0, 0, 1, 0], [], []>} : vector<8x16xf32>, vector<8x16xf32>, vector<8x8xf32> -> vector<8x8xf32>
    %cst_8 = arith.constant 2.500000e-01 : f32
    %13 = vector.broadcast %cst_8 : f32 to vector<8x8xf32>
    %14 = arith.mulf %12, %13 : vector<8x8xf32>
    %15 = vector.broadcast %3 : vector<1x8xf32> to vector<8x8xf32>
    %16 = arith.addf %14, %15 : vector<8x8xf32>
    %cst_9 = arith.constant dense<0xFF800000> : vector<8xf32>
    %17 = vector.multi_reduction <maximumf>, %16, %cst_9 [1] : vector<8x8xf32> to vector<8xf32>
    %18 = vector.shape_cast %17 : vector<8xf32> to vector<8x1xf32>
    %19 = vector.broadcast %18 : vector<8x1xf32> to vector<8x8xf32>
    %20 = arith.subf %16, %19 : vector<8x8xf32>
    %21 = math.exp %20 : vector<8x8xf32>
    %cst_10 = arith.constant dense<0.000000e+00> : vector<8xf32>
    %22 = vector.multi_reduction <add>, %21, %cst_10 [1] : vector<8x8xf32> to vector<8xf32>
    %23 = vector.shape_cast %22 : vector<8xf32> to vector<8x1xf32>
    %24 = tpu.reciprocal %23 {approx = true} : vector<8x1xf32> -> vector<8x1xf32>
    %25 = arith.mulf %23, %24 : vector<8x1xf32>
    %cst_11 = arith.constant 2.000000e+00 : f32
    %26 = vector.broadcast %cst_11 : f32 to vector<8x1xf32>
    %27 = arith.subf %26, %25 : vector<8x1xf32>
    %28 = arith.mulf %24, %27 : vector<8x1xf32>
    %29 = vector.broadcast %28 : vector<8x1xf32> to vector<8x8xf32>
    %30 = arith.mulf %21, %29 : vector<8x8xf32>
    %cst_12 = arith.constant dense<0.000000e+00> : vector<8x16xf32>
    %31 = tpu.matmul %30, %11, %cst_12 {dimension_numbers = #tpu.dot_dimension_numbers<[1], [0], [0], [1], [0, 0, 1, 1], [], []>} : vector<8x8xf32>, vector<8x16xf32>, vector<8x16xf32> -> vector<8x16xf32>
    %32 = vector.extract_strided_slice %6 {offsets = [0, 16], sizes = [8, 16], strides = [1, 1]} : vector<8x64xf32> to vector<8x16xf32>
    %33 = vector.extract_strided_slice %7 {offsets = [0, 16], sizes = [8, 16], strides = [1, 1]} : vector<8x64xf32> to vector<8x16xf32>
    %34 = vector.extract_strided_slice %8 {offsets = [0, 16], sizes = [8, 16], strides = [1, 1]} : vector<8x64xf32> to vector<8x16xf32>
    %cst_13 = arith.constant dense<0.000000e+00> : vector<8x8xf32>
    %35 = tpu.matmul %32, %33, %cst_13 {dimension_numbers = #tpu.dot_dimension_numbers<[1], [1], [0], [0], [0, 0, 1, 0], [], []>} : vector<8x16xf32>, vector<8x16xf32>, vector<8x8xf32> -> vector<8x8xf32>
    %cst_14 = arith.constant 2.500000e-01 : f32
    %36 = vector.broadcast %cst_14 : f32 to vector<8x8xf32>
    %37 = arith.mulf %35, %36 : vector<8x8xf32>
    %38 = vector.broadcast %3 : vector<1x8xf32> to vector<8x8xf32>
    %39 = arith.addf %37, %38 : vector<8x8xf32>
    %cst_15 = arith.constant dense<0xFF800000> : vector<8xf32>
    %40 = vector.multi_reduction <maximumf>, %39, %cst_15 [1] : vector<8x8xf32> to vector<8xf32>
    %41 = vector.shape_cast %40 : vector<8xf32> to vector<8x1xf32>
    %42 = vector.broadcast %41 : vector<8x1xf32> to vector<8x8xf32>
    %43 = arith.subf %39, %42 : vector<8x8xf32>
    %44 = math.exp %43 : vector<8x8xf32>
    %cst_16 = arith.constant dense<0.000000e+00> : vector<8xf32>
    %45 = vector.multi_reduction <add>, %44, %cst_16 [1] : vector<8x8xf32> to vector<8xf32>
    %46 = vector.shape_cast %45 : vector<8xf32> to vector<8x1xf32>
    %47 = tpu.reciprocal %46 {approx = true} : vector<8x1xf32> -> vector<8x1xf32>
    %48 = arith.mulf %46, %47 : vector<8x1xf32>
    %cst_17 = arith.constant 2.000000e+00 : f32
    %49 = vector.broadcast %cst_17 : f32 to vector<8x1xf32>
    %50 = arith.subf %49, %48 : vector<8x1xf32>
    %51 = arith.mulf %47, %50 : vector<8x1xf32>
    %52 = vector.broadcast %51 : vector<8x1xf32> to vector<8x8xf32>
    %53 = arith.mulf %44, %52 : vector<8x8xf32>
    %cst_18 = arith.constant dense<0.000000e+00> : vector<8x16xf32>
    %54 = tpu.matmul %53, %34, %cst_18 {dimension_numbers = #tpu.dot_dimension_numbers<[1], [0], [0], [1], [0, 0, 1, 1], [], []>} : vector<8x8xf32>, vector<8x16xf32>, vector<8x16xf32> -> vector<8x16xf32>
    %55 = vector.extract_strided_slice %6 {offsets = [0, 32], sizes = [8, 16], strides = [1, 1]} : vector<8x64xf32> to vector<8x16xf32>
    %56 = vector.extract_strided_slice %7 {offsets = [0, 32], sizes = [8, 16], strides = [1, 1]} : vector<8x64xf32> to vector<8x16xf32>
    %57 = vector.extract_strided_slice %8 {offsets = [0, 32], sizes = [8, 16], strides = [1, 1]} : vector<8x64xf32> to vector<8x16xf32>
    %cst_19 = arith.constant dense<0.000000e+00> : vector<8x8xf32>
    %58 = tpu.matmul %55, %56, %cst_19 {dimension_numbers = #tpu.dot_dimension_numbers<[1], [1], [0], [0], [0, 0, 1, 0], [], []>} : vector<8x16xf32>, vector<8x16xf32>, vector<8x8xf32> -> vector<8x8xf32>
    %cst_20 = arith.constant 2.500000e-01 : f32
    %59 = vector.broadcast %cst_20 : f32 to vector<8x8xf32>
    %60 = arith.mulf %58, %59 : vector<8x8xf32>
    %61 = vector.broadcast %3 : vector<1x8xf32> to vector<8x8xf32>
    %62 = arith.addf %60, %61 : vector<8x8xf32>
    %cst_21 = arith.constant dense<0xFF800000> : vector<8xf32>
    %63 = vector.multi_reduction <maximumf>, %62, %cst_21 [1] : vector<8x8xf32> to vector<8xf32>
    %64 = vector.shape_cast %63 : vector<8xf32> to vector<8x1xf32>
    %65 = vector.broadcast %64 : vector<8x1xf32> to vector<8x8xf32>
    %66 = arith.subf %62, %65 : vector<8x8xf32>
    %67 = math.exp %66 : vector<8x8xf32>
    %cst_22 = arith.constant dense<0.000000e+00> : vector<8xf32>
    %68 = vector.multi_reduction <add>, %67, %cst_22 [1] : vector<8x8xf32> to vector<8xf32>
    %69 = vector.shape_cast %68 : vector<8xf32> to vector<8x1xf32>
    %70 = tpu.reciprocal %69 {approx = true} : vector<8x1xf32> -> vector<8x1xf32>
    %71 = arith.mulf %69, %70 : vector<8x1xf32>
    %cst_23 = arith.constant 2.000000e+00 : f32
    %72 = vector.broadcast %cst_23 : f32 to vector<8x1xf32>
    %73 = arith.subf %72, %71 : vector<8x1xf32>
    %74 = arith.mulf %70, %73 : vector<8x1xf32>
    %75 = vector.broadcast %74 : vector<8x1xf32> to vector<8x8xf32>
    %76 = arith.mulf %67, %75 : vector<8x8xf32>
    %cst_24 = arith.constant dense<0.000000e+00> : vector<8x16xf32>
    %77 = tpu.matmul %76, %57, %cst_24 {dimension_numbers = #tpu.dot_dimension_numbers<[1], [0], [0], [1], [0, 0, 1, 1], [], []>} : vector<8x8xf32>, vector<8x16xf32>, vector<8x16xf32> -> vector<8x16xf32>
    %78 = vector.extract_strided_slice %6 {offsets = [0, 48], sizes = [8, 16], strides = [1, 1]} : vector<8x64xf32> to vector<8x16xf32>
    %79 = vector.extract_strided_slice %7 {offsets = [0, 48], sizes = [8, 16], strides = [1, 1]} : vector<8x64xf32> to vector<8x16xf32>
    %80 = vector.extract_strided_slice %8 {offsets = [0, 48], sizes = [8, 16], strides = [1, 1]} : vector<8x64xf32> to vector<8x16xf32>
    %cst_25 = arith.constant dense<0.000000e+00> : vector<8x8xf32>
    %81 = tpu.matmul %78, %79, %cst_25 {dimension_numbers = #tpu.dot_dimension_numbers<[1], [1], [0], [0], [0, 0, 1, 0], [], []>} : vector<8x16xf32>, vector<8x16xf32>, vector<8x8xf32> -> vector<8x8xf32>
    %cst_26 = arith.constant 2.500000e-01 : f32
    %82 = vector.broadcast %cst_26 : f32 to vector<8x8xf32>
    %83 = arith.mulf %81, %82 : vector<8x8xf32>
    %84 = vector.broadcast %3 : vector<1x8xf32> to vector<8x8xf32>
    %85 = arith.addf %83, %84 : vector<8x8xf32>
    %cst_27 = arith.constant dense<0xFF800000> : vector<8xf32>
    %86 = vector.multi_reduction <maximumf>, %85, %cst_27 [1] : vector<8x8xf32> to vector<8xf32>
    %87 = vector.shape_cast %86 : vector<8xf32> to vector<8x1xf32>
    %88 = vector.broadcast %87 : vector<8x1xf32> to vector<8x8xf32>
    %89 = arith.subf %85, %88 : vector<8x8xf32>
    %90 = math.exp %89 : vector<8x8xf32>
    %cst_28 = arith.constant dense<0.000000e+00> : vector<8xf32>
    %91 = vector.multi_reduction <add>, %90, %cst_28 [1] : vector<8x8xf32> to vector<8xf32>
    %92 = vector.shape_cast %91 : vector<8xf32> to vector<8x1xf32>
    %93 = tpu.reciprocal %92 {approx = true} : vector<8x1xf32> -> vector<8x1xf32>
    %94 = arith.mulf %92, %93 : vector<8x1xf32>
    %cst_29 = arith.constant 2.000000e+00 : f32
    %95 = vector.broadcast %cst_29 : f32 to vector<8x1xf32>
    %96 = arith.subf %95, %94 : vector<8x1xf32>
    %97 = arith.mulf %93, %96 : vector<8x1xf32>
    %98 = vector.broadcast %97 : vector<8x1xf32> to vector<8x8xf32>
    %99 = arith.mulf %90, %98 : vector<8x8xf32>
    %cst_30 = arith.constant dense<0.000000e+00> : vector<8x16xf32>
    %100 = tpu.matmul %99, %80, %cst_30 {dimension_numbers = #tpu.dot_dimension_numbers<[1], [0], [0], [1], [0, 0, 1, 1], [], []>} : vector<8x8xf32>, vector<8x16xf32>, vector<8x16xf32> -> vector<8x16xf32>
    %101 = tpu.concatenate %31, %54, %77, %100 in 1 : vector<8x16xf32>, vector<8x16xf32>, vector<8x16xf32>, vector<8x16xf32> -> vector<8x64xf32>
    %c0_31 = arith.constant 0 : index
    %c0_32 = arith.constant 0 : index
    %102 = vector.load %arg4[%c0_31, %c0_32] : memref<64x32xf32, #tpu.memory_space<vmem>>, vector<64x32xf32>
    %cst_33 = arith.constant dense<0.000000e+00> : vector<8x32xf32>
    %103 = tpu.matmul %101, %102, %cst_33 {dimension_numbers = #tpu.dot_dimension_numbers<[1], [0], [0], [1], [0, 0, 1, 1], [], []>} : vector<8x64xf32>, vector<64x32xf32>, vector<8x32xf32> -> vector<8x32xf32>
    %c0_34 = arith.constant 0 : index
    %c0_35 = arith.constant 0 : index
    %c0_36 = arith.constant 0 : index
    %104 = vector.load %arg5[%c0_34, %c0_35, %c0_36] : memref<1x8x32xf32, #tpu.memory_space<vmem>>, vector<1x8x32xf32>
    %105 = vector.shape_cast %104 : vector<1x8x32xf32> to vector<8x32xf32>
    %106 = vector.shape_cast %103 : vector<8x32xf32> to vector<1x8x32xf32>
    tpu.vector_store %arg5[%c0_34, %c0_35, %c0_36], %106 {strides = array<i32>} : memref<1x8x32xf32, #tpu.memory_space<vmem>>, vector<1x8x32xf32>,
    return
  }
  func.func @transform_0(%arg0: i32) -> (i32, i32, i32) {
    %c0_i32 = arith.constant 0 : i32
    %c0_i32_0 = arith.constant 0 : i32
    %c0_i32_1 = arith.constant 0 : i32
    return %arg0, %c0_i32, %c0_i32_0 : i32, i32, i32
  }
  func.func @transform_1(%arg0: i32) -> (i32, i32, i32) {
    %c0_i32 = arith.constant 0 : i32
    %c0_i32_0 = arith.constant 0 : i32
    %c0_i32_1 = arith.constant 0 : i32
    return %arg0, %c0_i32, %c0_i32_0 : i32, i32, i32
  }
  func.func @transform_2(%arg0: i32) -> (i32, i32) {
    %c0_i32 = arith.constant 0 : i32
    %c0_i32_0 = arith.constant 0 : i32
    %c0_i32_1 = arith.constant 0 : i32
    return %c0_i32, %c0_i32_0 : i32, i32
  }
  func.func @transform_3(%arg0: i32) -> (i32, i32) {
    %c0_i32 = arith.constant 0 : i32
    %c0_i32_0 = arith.constant 0 : i32
    %c0_i32_1 = arith.constant 0 : i32
    return %c0_i32, %c0_i32_0 : i32, i32
  }
  func.func @transform_4(%arg0: i32) -> (i32, i32, i32) {
    %c0_i32 = arith.constant 0 : i32
    %c0_i32_0 = arith.constant 0 : i32
    %c0_i32_1 = arith.constant 0 : i32
    return %arg0, %c0_i32, %c0_i32_0 : i32, i32, i32
  }
}

</mosaic_0001>

<bundles_post_ra>
// kernel: tpu_custom_call.1
= control target key start
LH: loop header
LB: loop body
LE: loop exit
PB: predicated region body
PF: predicated region fallthrough
CT: control target
= control target key end

     0   :  { %9 = vsyncpa [#allocation3], 0  ;;  %s1676_s0 = inlined_call_operand.vmem [shape: f32[2,8,32], index: 0, kind: input, shape index: {}]   ;;  %s1677_s1 = inlined_call_operand.vmem [shape: f32[2,1,8], index: 1, kind: input, shape index: {}]   ;;  %s1678_s2 = inlined_call_operand.vmem [shape: f32[32,192], index: 2, kind: input, shape index: {}]   ;;  %s1679_s3 = inlined_call_operand.vmem [shape: f32[64,32], index: 3, kind: input, shape index: {}]   ;;  %s1680_s4 = inlined_call_operand.hbm [shape: f32[2,8,32], index: 4, kind: output, shape index: {}]  }
   0x1   :  { %11 = vsyncpa [#allocation3 + $0x1], 0  ;;  %s1452_s15 = smov 0   ;;  %s1454_s16 = smov 0  }
   0x2   :  { %s1456_s17 = smov 0   ;;  %s1458_s18 = smov 0  }
   0x3 LB: > { %s1473_s19 = sadd.s32 4294967295, %s1414_s18   ;;  %s1158_s20 = sadd.s32 4294967294, %s1414_s18   ;;  %s1414_s18 = sphi %s1458_s18, %s1686_s18   ;;  %s1410_s17 = sphi %s1456_s17, %s1685_s17   ;;  %s1406_s16 = sphi %s1454_s16, %s1684_s16   ;;  %s1402_s15 = sphi %s1452_s15, %s1683_s15  }
   0x4   : > { %s1477_s21 = sadd.s32 1, %s1414_s18   ;;  %s118_s22 = sadd.s32 1, %s1410_s17 }
   0x5   : > { %s115_s23 = ssub.s32 %s1414_s18, %s1477_s21  ;;  %p128_p0 = scmp.ne.s32.totalorder %s1410_s17, %s1406_s16 }
   0x6   : > { %p116_p1 = scmp.eq.s32.totalorder %s115_s23, 0  ;;  %p129_p2 = scmp.eq.s32.totalorder %s1473_s19, 1 }
   0x7   : > { %p134_p3 = scmp.ne.s32.totalorder %s1406_s16, %s1402_s15  ;;  %p135_p4 = scmp.eq.s32.totalorder %s1158_s20, 1 }
   0x8   : > { %s1488_s24 = scalar_select %p116_p1, %s1410_s17, %s118_s22  }
   0x9   : > { %p1490_p5 = por %p129_p2, %p128_p0  ;;  %p1494_p6 = por %p135_p4, %p134_p3 }
   0xa   : > { %p1161_p7 = scmp.ge.s32.totalorder %s1414_s18, 1  ;;  %p172_p8 = scmp.lt.s32.totalorder %s1414_s18, 3 }
   0xc   : > { %p173_p9 = pnand %p1161_p7, %p172_p8 }
   0xd   : > { %v210_v0 = vld [vmem:[%s1678_s2 + $0x8] sm:$0xff] (!%p173_p9)  ;;  %v212_v1 = vld [vmem:[%s1678_s2 + $0x18] sm:$0xff] (!%p173_p9)  ;;  %v209_v2 = vld [vmem:[%s1678_s2] sm:$0xff] (!%p173_p9)  ;;  %p200_p10 = scmp.lt.s32.totalorder (!%p173_p9), %s1473_s19, 1  ;;  %v1416_v7 = vmov (!%p173_p9), 0.0   ;;  %vm217_vm0 = vcmask (!%p173_p9), 261120  }
   0xe   : > { %176 = sbr.rel (%p173_p9) target bundleno = 1503 (0x5df), region = 36  ;;  %v1267_v3 = vpack.c.bf16 (!%p173_p9), %v212_v1, %v210_v0  ;;  %v211_v4 = vld [vmem:[%s1678_s2 + $0x10] sm:$0xff] (!%p173_p9)  ;;  %v214_v5 = vld [vmem:[%s1678_s2 + $0x28] sm:$0xff] (!%p173_p9)  ;;  %v216_v6 = vld [vmem:[%s1678_s2 + $0x38] sm:$0xff] (!%p173_p9)  ;;  %285 = vmatprep.mubr.f32.mxu1 (!%p173_p9), %v1416_v7  ;;  %1218 = vmatprep.subr.mxu0 (!%p173_p9), %v1416_v7  ;;  %vm1417_vm1 = vmmov (!%p173_p9), 0   ;;  %s1418_s5 = smov (!%p173_p9), 112  }
   0xf   : > { %v1269_v8 = vpack.c.bf16 (!%p173_p9), %v211_v4, %v209_v2  ;;  %v1271_v9 = vpack.c.bf16 (!%p173_p9), %v216_v6, %v214_v5  ;;  %v213_v10 = vld [vmem:[%s1678_s2 + $0x20] sm:$0xff] (!%p173_p9)  ;;  %v215_v11 = vld [vmem:[%s1678_s2 + $0x30] sm:$0xff] (!%p173_p9)  ;;  %1220 = vmatprep.mubr.msk.f32.mxu0 (!%p173_p9), %vm1417_vm1, %v1416_v7  ;;  %s1419_s6 = smov (!%p173_p9), 64   ;;  %s1420_s7 = smov (!%p173_p9), 32   ;;  %vm295_vm2 = vcmask (!%p173_p9), 130048   ;;  %vm378_vm3 = vcmask (!%p173_p9), 64512  }
  0x10   : > { %1268 = vmatprep.subr.bf16.mxu1 (!%p173_p9), %v1267_v3  ;;  %v1273_v12 = vpack.c.bf16 (!%p173_p9), %v215_v11, %v213_v10  ;;  %s1421_s8 = smov (!%p173_p9), 48   ;;  %s1422_s9 = smov (!%p173_p9), 16   ;;  %vm991_vm4 = vcmask (!%p173_p9), 392192   ;;  %vm1001_vm5 = vcmask (!%p173_p9), 523264  }
  0x11   : > { %1270 = vmatpush1.bf16.msra.mxu1 (!%p173_p9), %v1269_v8  ;;  %s1423_s10 = smov (!%p173_p9), 96   ;;  %s1424_s11 = smov (!%p173_p9), 80  }
  0x12   : > { %1272 = vmatprep.subr.bf16.mxu1 (!%p173_p9), %v1271_v9 }
  0x15   : > { %s1528_s23 = scalar_select %p200_p10, %s1473_s19, 1  ;;  %1274 = vmatpush1.bf16.msra.mxu1 %v1273_v12 }
  0x16   : > { %1208 = vmatprep.subr.mxu1 %v1416_v7 }
  0x17   : > { %s1163_s27 = sshll.u32 %s1528_s23, 3  ;;  %s206_s14 = scalar_lea.vmem %s1677_s1, %s1528_s23 }
  0x18   : > { %s203_s30 = scalar_lea.vmem %s1676_s0, %s1163_s27  ;;  %v1167_v24 = vld [vmem:[%s206_s14] ss:$0 sm:$0xff]  ;;  %s1180_s23 = sshll.u32 %s1473_s19, 7 }
  0x19   : > { %v207_v13 = vld [vmem:[%s203_s30] sm:$0xff]  ;;  %s1633_s30 = scalar_lea.hbm %s1680_s4, %s1180_s23  ;;  %s1426_s19 = smov [#allocation2]  }
  0x1a   : > { %1164 = vmatmul.mubr.msk.f32.vlgmr.msra.gmra.mrb[0].mxu1 %vm217_vm0, %v207_v13 }
  0x1b   : > { %1210 = vmatprep.mubr.msk.f32.mxu1 %vm1417_vm1, %v1416_v7 }
  0xed   : > { %v287_v14 = vpop.f32.mrb[0].mxu1 }
  0xee   : > { %466 = vrot.lane.b32.xlu1 %v287_v14, %s1418_s5  ;;  %293 = vrot.lane.b32.xlu0 %v287_v14, %s1419_s6  ;;  %v1541_v15 = vpop.f32.mrb[1].mxu1 }
  0xf2   : > { %639 = vrot.lane.b32.xlu1 %v287_v14, %s1420_s7  ;;  %468 = vrot.lane.b32.xlu0 %v287_v14, %s1421_s8 }
  0xf6   : > { %809 = vrot.lane.b32.xlu1 %v287_v14, %s1422_s9  ;;  %637 = vrot.lane.b32.xlu0 %v287_v14, %s1423_s10 }
  0xfa   : > { %807 = vrot.lane.b32.xlu0 %v287_v14, %s1424_s11 }
 0x160   : > { %v467_v16 = vpop.permute.xlu1 %466  ;;  %v294_v17 = vpop.permute.xlu0 %293 }
 0x161   : > { %1209 = vmatpush3.xpose.msk.msra.mxu1 %vm295_vm2, %v294_v17 }
 0x162   : > { %1213 = vmatprep.subr.mxu1 %v1416_v7 }
 0x164   : > { %1211 = vmatmul.mubr.msk.f32.vlgmr.msra.gmra.mrb[2].mxu1 %vm295_vm2, %v287_v14  ;;  %v469_v18 = vpop.permute.xlu0 %468  ;;  %v640_v19 = vpop.permute.xlu1 %639 }
 0x165   : > { %1214 = vmatpush3.msra.mxu1 %v1541_v15  ;;  %1219 = vmatpush3.xpose.msk.msra.mxu0 %vm295_vm2, %v469_v18 }
 0x166   : > { %1228 = vmatprep.subr.mxu0 %v1416_v7  ;;  %1215 = vmatprep.mubr.msk.f32.mxu1 %vm1417_vm1, %v1416_v7 }
 0x167   : > { %1223 = vmatprep.subr.mxu1 %v1416_v7 }
 0x168   : > { %1221 = vmatmul.mubr.msk.f32.vlgmr.msra.gmra.mrb[0].mxu0 %vm295_vm2, %v467_v16  ;;  %v638_v20 = vpop.permute.xlu0 %637  ;;  %v810_v21 = vpop.permute.xlu1 %809 }
 0x169   : > { %1229 = vmatpush3.xpose.msk.msra.mxu0 %vm295_vm2, %v640_v19  ;;  %1230 = vmatprep.mubr.msk.f32.mxu0 %vm1417_vm1, %v1416_v7 }
 0x16a   : > { %1238 = vmatprep.subr.mxu0 %v1416_v7 }
 0x16c   : > { %1231 = vmatmul.mubr.msk.f32.vlgmr.msra.gmra.mrb[2].mxu0 %vm295_vm2, %v638_v20  ;;  %v808_v22 = vpop.permute.xlu0 %807 }
 0x16d   : > { %1239 = vmatpush3.xpose.msk.msra.mxu0 %vm295_vm2, %v810_v21  ;;  %1240 = vmatprep.mubr.msk.f32.mxu0 %vm1417_vm1, %v1416_v7 }
 0x170   : > { %1241 = vmatmul.mubr.msk.f32.vlgmr.msra.gmra.mrb[4].mxu0 %vm295_vm2, %v808_v22 }
 0x171   : > { %1264 = vmatprep.mubr.msk.f32.mxu0 %vm1417_vm1, %v1416_v7 }
 0x237   : > { %v366_v23 = vpop.f32.mrb[2].mxu1 }
 0x238   : > { %v370_v25 = vmul.f32 0.25, %v366_v23  ;;  %v1212_v26 = vpop.f32.mrb[3].mxu1 }
 0x23a   : > { %v377_v27 = vadd.f32 %v1167_v24, %v370_v25 }
 0x23b   : > { %v540_v28 = vpop.f32.mrb[0].mxu0 }
 0x23c   : > { %v544_v29 = vmul.f32 0.25, %v540_v28  ;;  %v1222_v30 = vpop.f32.mrb[1].mxu0  ;;  %v379_v31 = vsel %vm378_vm3, %v377_v27, -inf  ;;  %v993_v28 = vld [vmem:[%s1679_s3] sm:$0xff] }
 0x23d   : > { %380 = vmax.xlane.f32.xlu1 %v379_v31  ;;  %v1425_v30 = vmov 0.0|0.0  }
 0x23e   : > { %v545_v32 = vadd.f32 %v1167_v24, %v544_v29  ;;  %v994_v29 = vld [vmem:[%s1679_s3 + $0x8] sm:$0xff]  ;;  %1275 = vmatprep.subr.bf16.mxu0 %v1425_v30 }
 0x23f   : > { %v711_v33 = vpop.f32.mrb[2].mxu0  ;;  %v1276_v31 = vpack.c.bf16 %v994_v29, %v993_v28 }
 0x240   : > { %v715_v34 = vmul.f32 0.25, %v711_v33  ;;  %v1232_v35 = vpop.f32.mrb[3].mxu0  ;;  %v546_v36 = vsel %vm378_vm3, %v545_v32, -inf }
 0x241   : > { %547 = vmax.xlane.f32.xlu0 %v546_v36  ;;  %1277 = vmatpush3.bf16.msra.mxu0 %v1276_v31  ;;  %v997_v35 = vld [vmem:[%s1679_s3 + $0x20] sm:$0xff]  ;;  %v998_v36 = vld [vmem:[%s1679_s3 + $0x28] sm:$0xff] }
 0x242   : > { %v716_v37 = vadd.f32 %v1167_v24, %v715_v34  ;;  %1278 = vmatprep.subr.bf16.mxu0 %v1425_v30 }
 0x243   : > { %v881_v38 = vpop.f32.mrb[4].mxu0 }
 0x244   : > { %v885_v39 = vmul.f32 0.25, %v881_v38  ;;  %v1242_v40 = vpop.f32.mrb[5].mxu0  ;;  %v717_v41 = vsel %vm378_vm3, %v716_v37, -inf  ;;  %v1282_v38 = vpack.c.bf16 %v998_v36, %v997_v35 }
 0x245   : > { %718 = vmax.xlane.f32.xlu0 %v717_v41  ;;  %v999_v40 = vld [vmem:[%s1679_s3 + $0x30] sm:$0xff]  ;;  %v1000_v41 = vld [vmem:[%s1679_s3 + $0x38] sm:$0xff] }
 0x246   : > { %v886_v42 = vadd.f32 %v1167_v24, %v885_v39 }
 0x248   : > { %v887_v43 = vsel %vm378_vm3, %v886_v42, -inf }
 0x249   : > { %888 = vmax.xlane.f32.xlu1 %v887_v43  ;;  %v1285_v43 = vpack.c.bf16 %v1000_v41, %v999_v40 }
 0x2ca   : > { %v381_v44 = vpop.xlane.xlu1 %380 }
 0x2cb   : > { %v382_v45 = vsub.f32 %v377_v27, %v381_v44 }
 0x2cd   : > { %v383_v46 = vmul.f32 1.442695, %v382_v45 }
 0x2ce   : > { %v548_v47 = vpop.xlane.xlu0 %547 }
 0x2cf   : > { %1336 = vpow2.f32 %v383_v46  ;;  %v549_v48 = vsub.f32 %v545_v32, %v548_v47  ;;  %v996_v32 = vld [vmem:[%s1679_s3 + $0x18] sm:$0xff] }
 0x2d1   : > { %v550_v49 = vmul.f32 1.442695, %v549_v48 }
 0x2d2   : > { %v719_v50 = vpop.xlane.xlu0 %718 }
 0x2d3   : > { %1338 = vpow2.f32 %v550_v49  ;;  %v720_v51 = vsub.f32 %v716_v37, %v719_v50 }
 0x2d5   : > { %v721_v52 = vmul.f32 1.442695, %v720_v51 }
 0x2d6   : > { %v889_v59 = vpop.xlane.xlu1 %888 }
 0x2d7   : > { %1340 = vpow2.f32 %v721_v52  ;;  %v890_v60 = vsub.f32 %v886_v42, %v889_v59 }
 0x2d9   : > { %v1337_v53 = vpop.eup %1336  ;;  %v891_v61 = vmul.f32 1.442695, %v890_v60 }
 0x2da   : > { %v385_v54 = vsel %vm378_vm3, %v1337_v53, 0.0 }
 0x2db   : > { %386 = vadd.xlane.f32.xlu0 %v385_v54  ;;  %1342 = vpow2.f32 %v891_v61 }
 0x2dd   : > { %v1339_v55 = vpop.eup %1338 }
 0x2de   : > { %v552_v56 = vsel %vm378_vm3, %v1339_v55, 0.0 }
 0x2df   : > { %553 = vadd.xlane.f32.xlu1 %v552_v56 }
 0x2e1   : > { %v1341_v57 = vpop.eup %1340 }
 0x2e2   : > { %v723_v58 = vsel %vm378_vm3, %v1341_v57, 0.0 }
 0x2e3   : > { %724 = vadd.xlane.f32.xlu0 %v723_v58 }
 0x2e5   : > { %v1343_v62 = vpop.eup %1342 }
 0x2e6   : > { %v893_v63 = vsel %vm378_vm3, %v1343_v62, 0.0 }
 0x2f0   : > { %731 = vrot.lane.b32.xlu1 %v1541_v15, %s1423_s10  ;;  %s1356_s10 = sshll.u32 %s1426_s19, 4  ;;  %s1357_s10 = int_to_ptr.vmem [resolvable:$false] %s1356_s10 }
 0x2f9   : > { %561 = vrot.lane.b32.xlu0 %v1541_v15, %s1418_s5 }
 0x314   : > { %894 = vadd.xlane.f32.xlu1 %v893_v63 }
 0x325   : > { %901 = vrot.lane.b32.xlu1 %v1541_v15, %s1424_s11  ;;  %s1358_s11 = scalar_lea.vmem %s1357_s10, 256 }
 0x368   : > { %v387_v0 = vpop.xlane.xlu0 %386 }
 0x369   : > { %1344 = vrcp.f32 %v387_v0 }
 0x36c   : > { %v554_v1 = vpop.xlane.xlu1 %553 }
 0x36d   : > { %1346 = vrcp.f32 %v554_v1 }
 0x370   : > { %v725_v2 = vpop.xlane.xlu0 %724  ;;  %v732_v19 = vpop.permute.xlu1 %731 }
 0x371   : > { %1348 = vrcp.f32 %v725_v2 }
 0x373   : > { %v1345_v3 = vpop.eup %1344 }
 0x374   : > { %v389_v4 = vmul.f32 %v1345_v3, %v387_v0  ;;  %v562_v16 = vpop.permute.xlu0 %561 }
 0x376   : > { %v390_v5 = vsub.f32 2.0, %v389_v4 }
 0x377   : > { %v1347_v6 = vpop.eup %1346 }
 0x378   : > { %v391_v8 = vmul.f32 %v1345_v3, %v390_v5  ;;  %v556_v9 = vmul.f32 %v1347_v6, %v554_v1 }
 0x37a   : > { %v392_v10 = vmul.f32 %v1337_v53, %v391_v8  ;;  %v557_v11 = vsub.f32 2.0, %v556_v9 }
 0x37b   : > { %v1349_v12 = vpop.eup %1348 }
 0x37c   : > { %v558_v13 = vmul.f32 %v1347_v6, %v557_v11  ;;  %v727_v14 = vmul.f32 %v1349_v12, %v725_v2  ;;  %1216 = vmatmul.mubr.msk.f32.vlgmr.msra.gmra.mrb[4].mxu1 %vm378_vm3, %v392_v10 }
 0x37d   : > { %1224 = vmatpush3.msra.mxu1 %v562_v16  ;;  %1225 = vmatprep.mubr.msk.f32.mxu1 %vm1417_vm1, %v1416_v7 }
 0x37e   : > { %v559_v15 = vmul.f32 %v1339_v55, %v558_v13  ;;  %v728_v17 = vsub.f32 2.0, %v727_v14  ;;  %1233 = vmatprep.subr.mxu1 %v1416_v7 }
 0x380   : > { %v729_v18 = vmul.f32 %v1349_v12, %v728_v17  ;;  %1226 = vmatmul.mubr.msk.f32.vlgmr.msra.gmra.mrb[6].mxu1 %vm378_vm3, %v559_v15 }
 0x381   : > { %1234 = vmatpush3.msra.mxu1 %v732_v19  ;;  %1235 = vmatprep.mubr.msk.f32.mxu1 %vm1417_vm1, %v1416_v7 }
 0x382   : > { %v730_v20 = vmul.f32 %v1341_v57, %v729_v18  ;;  %1243 = vmatprep.subr.mxu1 %v1416_v7 }
 0x384   : > { %1236 = vmatmul.mubr.msk.f32.vlgmr.msra.gmra.mrb[8].mxu1 %vm378_vm3, %v730_v20 }
 0x385   : > { %1245 = vmatprep.mubr.msk.f32.mxu1 %vm1417_vm1, %v1416_v7  ;;  %v995_v7 = vld [vmem:[%s1679_s3 + $0x10] sm:$0xff] }
 0x386   : > { %v1279_v33 = vpack.c.bf16 %v996_v32, %v995_v7 }
 0x388   : > { %1280 = vmatpush3.bf16.msra.mxu0 %v1279_v33 }
 0x389   : > { %1281 = vmatprep.subr.bf16.mxu0 %v1425_v30 }
 0x38c   : > { %1283 = vmatpush3.bf16.msra.mxu0 %v1282_v38 }
 0x38d   : > { %1284 = vmatprep.subr.bf16.mxu0 %v1425_v30 }
 0x390   : > { %1286 = vmatpush3.bf16.msra.mxu0 %v1285_v43 }
 0x3a1   : > { %v895_v21 = vpop.xlane.xlu1 %894 }
 0x3a2   : > { %1350 = vrcp.f32 %v895_v21 }
 0x3a5   : > { %v902_v22 = vpop.permute.xlu1 %901 }
 0x3a6   : > { %1244 = vmatpush3.msra.mxu1 %v902_v22 }
 0x3ac   : > { %v1351_v23 = vpop.eup %1350 }
 0x3ad   : > { %v897_v24 = vmul.f32 %v1351_v23, %v895_v21 }
 0x3af   : > { %v898_v25 = vsub.f32 2.0, %v897_v24 }
 0x3b1   : > { %v899_v26 = vmul.f32 %v1351_v23, %v898_v25 }
 0x3b3   : > { %v900_v27 = vmul.f32 %v1343_v62, %v899_v26 }
 0x3b5   : > { %1246 = vmatmul.mubr.msk.f32.vlgmr.msra.gmra.mrb[10].mxu1 %vm378_vm3, %v900_v27 }
 0x44f   : > { %v462_v34 = vpop.f32.mrb[4].mxu1 }
 0x450   : > { %v1217_v37 = vpop.f32.mrb[5].mxu1 }
 0x453   : > { %v633_v39 = vpop.f32.mrb[6].mxu1 }
 0x454   : > { %978 = vrot.lane.b32.xlu0 %v633_v39, %s1422_s9  ;;  %v1227_v42 = vpop.f32.mrb[7].mxu1 }
 0x457   : > { %v803_v44 = vpop.f32.mrb[8].mxu1 }
 0x458   : > { %982 = vrot.lane.b32.xlu1 %v803_v44, %s1420_s7  ;;  %v1237_v45 = vpop.f32.mrb[9].mxu1  ;;  %s197_s7 = sand.u32 1, %s1406_s16  }
 0x459   : > { %s1162_s9 = sshll.u32 %s197_s7, 3  ;;  %s1077_s5 = scalar_lea.sflag [#allocation3], %s197_s7 }
 0x45a   : > { %s199_s27 = scalar_lea.vmem [#allocation2], %s1162_s9 }
 0x45b   : > { %s1090_s28 = sshll.u32 %s199_s27, 4  ;;  %s1635_s28 = int_to_ptr.vmem [resolvable:$true] %s1090_s28 }
 0x45c   : > { %s1352_s6 = scalar_lea.vmem %s1635_s28, 128  ;;  %p1359_p0 = scmp.lt.s32.totalorder %s1635_s28, %s1357_s10 }
 0x45d   : > { %p1353_p11 = scmp.ne.s32.totalorder %s1635_s28, %s1352_s6  ;;  %p1360_p1 = scmp.lt.s32.totalorder %s1358_s11, %s1352_s6 }
 0x45f   : > { %p1354_p12 = pnand %p1353_p11, %p1490_p5  ;;  %p1361_p2 = por %p1360_p1, %p1359_p0 }
 0x461   : > { %p1355_p13 = pneg %p1354_p12 }
 0x463   : > { %p1362_p3 = pnand %p1361_p2, %p1355_p13 }
 0x488   : > { %v973_v46 = vpop.f32.mrb[10].mxu1 }
 0x489   : > { %986 = vrot.lane.b32.xlu0 %v973_v46, %s1421_s8  ;;  %v1247_v47 = vpop.f32.mrb[11].mxu1 }
 0x4c6   : > { %v979_v48 = vpop.permute.xlu0 %978 }
 0x4c7   : > { %v989_v50 = vsel %vm295_vm2, %v462_v34, %v979_v48 }
 0x4ca   : > { %v983_v49 = vpop.permute.xlu1 %982 }
 0x4cb   : > { %v990_v51 = vsel %vm217_vm0, %v989_v50, %v983_v49 }
 0x4fb   : > { %v987_v52 = vpop.permute.xlu0 %986 }
 0x4fc   : > { %v992_v53 = vsel %vm991_vm4, %v990_v51, %v987_v52 }
 0x4fd   : > { %1265 = vmatmul.mubr.msk.f32.vlgmr.msra.gmra.mrb[6].mxu0 %vm1001_vm5, %v992_v53 }
 0x5d0   : > { %v1071_v54 = vpop.f32.mrb[6].mxu0 }
 0x5d1   : > { %1075 = vst.msk [vmem:[%s199_s27] sm:$0xff] %vm217_vm0, %v1071_v54  ;;  %v1266_v55 = vpop.f32.mrb[7].mxu0 }
 0x5d2   : > { %1365 = shalt.err (!%p1362_p3)
}
 0x5d3   : > { %s1366_s12 = scalar_lea.hbm %s1633_s30, 128  ;;  %s1370_s20 = scalar_lea.hbm %s1680_s4, 256 }
 0x5d4   : > { %p1367_p4 = scmp.ne.s32.totalorder %s1633_s30, %s1366_s12  ;;  %p1371_p9 = scmp.lt.u32.totalorder %s1633_s30, %s1680_s4 }
 0x5d5   : > { %p1372_p10 = scmp.lt.u32.totalorder %s1370_s20, %s1366_s12  ;;  %p1374_p12 = scmp.lt.u32.totalorder %s1366_s12, %s1633_s30 }
 0x5d6   : > { %p1368_p7 = pnand %p1367_p4, %p1490_p5 }
 0x5d7   : > { %p1373_p11 = por %p1372_p10, %p1371_p9 }
 0x5d8   : > { %p1369_p8 = pneg %p1368_p7 }
 0x5d9   : > { %p1375_p13 = por %p1374_p12, %p1373_p11 }
 0x5db   : > { %p1376_p0 = pnand %p1375_p13, %p1369_p8 }
 0x5dd   : > { %1379 = shalt.err (!%p1376_p0)
}
 0x5de   : > { %1287 = dma.vmem_to_hbm [thread:$0]  (%p1490_p5), %s1635_s28, 128, %s1633_s30, %s1077_s5  }
 0x5df PF: > { %p1293_p1 = scmp.ge.s32.totalorder %s1414_s18, 2  ;;  %s1102_s9 = sand.u32 1, %s1402_s15  }
 0x5e0   : > { %s1103_s23 = scalar_lea.sflag [#allocation3], %s1102_s9 }
 0x5e1   : > { %p1290_p2 = pnand %p1293_p1, %p1494_p6 }
 0x5e3   : > { %1397 = dma.done.wait (!%p1290_p2), %s1103_s23, 128  }
 0x5e4   : > { %1399 = vsyncadd (!%p1290_p2), %s1103_s23, 4294967168  ;;  %p14_p3 = scmp.ge.s32.totalorder %s1477_s21, 4   ;;  %s1683_s15 = smov %s1406_s16 }
 0x5e5   : > { %s1684_s16 = smov %s1410_s17  ;;  %s1685_s17 = smov %s1488_s24 }
 0x5e6   : > { %s1686_s18 = smov %s1477_s21  ;;  %16 = sbr.rel (!%p14_p3) target bundleno = 3 (0x3), region = 74 }
 0x5ed   :  { %1108 = vsyncpa [#allocation3], 1 }
 0x5ee   :  { %1110 = vsyncpa [#allocation3 + $0x1], 1 }

</bundles_post_ra>
